<compile_context>
chip_gen: v5e
topology: v5e:2x2
jax: 0.10.0
libtpu: 0.0.40
codegen_flags: <defaults>
</compile_context>

<pallas_src>
import jax
import jax.numpy as jnp
from jax import lax
from jax.experimental import pallas as pl
from jax.experimental.pallas import tpu as pltpu

F32 = jnp.float32


def _pack_rows(rows, nrows, ncols):
    """Pack a list of (1, ncols) rows into an (nrows, ncols) slab (one store)."""
    rid = lax.broadcasted_iota(jnp.int32, (nrows, ncols), 0)
    acc = jnp.zeros((nrows, ncols), F32)
    for i, r in enumerate(rows):
        acc = jnp.where(rid == i, r, acc)
    return acc


def _camera_transf_kernel(p_ref, out_ref):
    # p_ref:   VMEM (8,  bb) f32, rows = [w0, w1, w2, v0, v1, v2, theta, pad]
    # out_ref: VMEM (16, bb) f32, rows = [R00..R22, T0, T1, T2, q0, q1, q2, q3]
    ncols = p_ref.shape[1]

    w0 = p_ref[0:1, :]
    w1 = p_ref[1:2, :]
    w2 = p_ref[2:3, :]
    v0 = p_ref[3:4, :]
    v1 = p_ref[4:5, :]
    v2 = p_ref[5:6, :]
    th = p_ref[6:7, :]

    st = jnp.sin(th)
    ct = jnp.cos(th)
    omc = 1.0 - ct          # 1 - cos(theta)
    tms = th - st           # theta - sin(theta)

    # Analytic square of the skew matrix:  W@W = w w^T - (w.w) I
    ww = w0 * w0 + w1 * w1 + w2 * w2

    # R = I + sin(theta) * W + (1 - cos(theta)) * W@W
    m00 = 1.0 + omc * (w0 * w0 - ww)
    m01 = -st * w2 + omc * (w0 * w1)
    m02 = st * w1 + omc * (w0 * w2)
    m10 = st * w2 + omc * (w1 * w0)
    m11 = 1.0 + omc * (w1 * w1 - ww)
    m12 = -st * w0 + omc * (w1 * w2)
    m20 = -st * w1 + omc * (w2 * w0)
    m21 = st * w0 + omc * (w2 * w1)
    m22 = 1.0 + omc * (w2 * w2 - ww)

    # T = (theta*I + (1-cos)*W + (theta-sin)*W@W) @ v
    #   = theta*v + (1-cos)*(w x v) + (theta-sin)*(w (w.v) - (w.w) v)
    wdv = w0 * v0 + w1 * v1 + w2 * v2
    cx0 = w1 * v2 - w2 * v1
    cx1 = w2 * v0 - w0 * v2
    cx2 = w0 * v1 - w1 * v0
    t0 = th * v0 + omc * cx0 + tms * (w0 * wdv - ww * v0)
    t1 = th * v1 + omc * cx1 + tms * (w1 * wdv - ww * v1)
    t2 = th * v2 + omc * cx2 + tms * (w2 * wdv - ww * v2)

    # ---- matrix_to_quaternion (real part first) ----
    q0sq = jnp.maximum(1.0 + m00 + m11 + m22, 0.0)
    q1sq = jnp.maximum(1.0 + m00 - m11 - m22, 0.0)
    q2sq = jnp.maximum(1.0 - m00 + m11 - m22, 0.0)
    q3sq = jnp.maximum(1.0 - m00 - m11 + m22, 0.0)
    q0 = jnp.sqrt(q0sq)
    q1 = jnp.sqrt(q1sq)
    q2 = jnp.sqrt(q2sq)
    q3 = jnp.sqrt(q3sq)

    # Approx EUP reciprocal is fine: the per-candidate scale cancels exactly
    # under the final normalization and the sign test is unaffected.
    inv_d0 = pl.reciprocal(2.0 * jnp.maximum(q0, 0.1), approx=True)
    inv_d1 = pl.reciprocal(2.0 * jnp.maximum(q1, 0.1), approx=True)
    inv_d2 = pl.reciprocal(2.0 * jnp.maximum(q2, 0.1), approx=True)
    inv_d3 = pl.reciprocal(2.0 * jnp.maximum(q3, 0.1), approx=True)

    c0 = [q0sq * inv_d0, (m21 - m12) * inv_d0, (m02 - m20) * inv_d0, (m10 - m01) * inv_d0]
    c1 = [(m21 - m12) * inv_d1, q1sq * inv_d1, (m10 + m01) * inv_d1, (m02 + m20) * inv_d1]
    c2 = [(m02 - m20) * inv_d2, (m10 + m01) * inv_d2, q2sq * inv_d2, (m12 + m21) * inv_d2]
    c3 = [(m10 - m01) * inv_d3, (m20 + m02) * inv_d3, (m21 + m12) * inv_d3, q3sq * inv_d3]

    # argmax over q_abs with first-max tie-breaking (matches torch semantics here).
    is0 = (q0 >= q1) & (q0 >= q2) & (q0 >= q3)
    is1 = jnp.logical_not(is0) & (q1 >= q2) & (q1 >= q3)
    is2 = jnp.logical_not(is0) & jnp.logical_not(is1) & (q2 >= q3)

    sel = [
        jnp.where(is0, c0[j], jnp.where(is1, c1[j], jnp.where(is2, c2[j], c3[j])))
        for j in range(4)
    ]

    # standardize: real part non-negative.
    flip = sel[0] < 0.0
    sel = [jnp.where(flip, -s, s) for s in sel]

    # F.normalize(..., dim=1, eps=1e-12) via a single rsqrt.
    sumsq = sel[0] * sel[0] + sel[1] * sel[1] + sel[2] * sel[2] + sel[3] * sel[3]
    inv_n = lax.rsqrt(jnp.maximum(sumsq, 1e-24))
    quat = [s * inv_n for s in sel]

    rows = [m00, m01, m02, m10, m11, m12, m20, m21, m22, t0, t1, t2] + quat
    out_ref[...] = _pack_rows(rows, 16, ncols)   # one unmasked full-tile store


def camera_transf_forward_batched(w, v, theta, *, block_lanes=2048):
    """Batched camera_transf forward.

    Args:
      w:     (B, 3) float array.
      v:     (B, 3) float array.
      theta: (B,)   float array.
    Returns:
      R (B, 3, 3), T (B, 3), quat (B, 4).
    """
    w = jnp.asarray(w, F32).reshape(-1, 3)
    v = jnp.asarray(v, F32).reshape(-1, 3)
    theta = jnp.asarray(theta, F32).reshape(-1)
    B = w.shape[0]

    # Per-step lane block (multiple of 128); pad B up to a multiple of it.
    bb = max(128, min(int(block_lanes), pl.cdiv(B, 128) * 128))
    b_pad = pl.cdiv(B, bb) * bb
    pad = b_pad - B

    w_t = jnp.pad(w, ((0, pad), (0, 0))).T                # (3, b_pad)
    v_t = jnp.pad(v, ((0, pad), (0, 0))).T                # (3, b_pad)
    th = jnp.pad(theta, ((0, pad),))[None, :]             # (1, b_pad)
    params = jnp.concatenate(
        [w_t, v_t, th, jnp.zeros((1, b_pad), F32)], axis=0)  # (8, b_pad)

    out = pl.pallas_call(
        _camera_transf_kernel,
        out_shape=jax.ShapeDtypeStruct((16, b_pad), F32),
        grid=(b_pad // bb,),
        in_specs=[pl.BlockSpec((8, bb), lambda i: (0, i))],
        out_specs=pl.BlockSpec((16, bb), lambda i: (0, i)),
        compiler_params=pltpu.CompilerParams(
            dimension_semantics=("parallel",)),
        cost_estimate=pl.CostEstimate(
            flops=150 * b_pad,
            transcendentals=11 * b_pad,
            bytes_accessed=(8 + 16) * 4 * b_pad),
    )(params)

    R = out[0:9, :B].T.reshape(B, 3, 3)
    T = out[9:12, :B].T
    quat = out[12:16, :B].T
    return R, T, quat


def camera_transf_forward(w, v, theta):
    """Single-pose API matching camera_transf.forward(): returns (R, T, r_quat)."""
    R, T, quat = camera_transf_forward_batched(
        jnp.reshape(jnp.asarray(w, F32), (1, 3)),
        jnp.reshape(jnp.asarray(v, F32), (1, 3)),
        jnp.reshape(jnp.asarray(theta, F32), (1,)),
        block_lanes=128)
    return R[0], T[0], quat  # quat keeps shape (1, 4) like the torch module


# ----------------------- pure-JAX reference for checking -----------------------
def _skew(w):
    zero = jnp.zeros((), w.dtype)
    return jnp.stack([
        jnp.stack([zero, -w[2], w[1]]),
        jnp.stack([w[2], zero, -w[0]]),
        jnp.stack([-w[1], w[0], zero]),
    ])


def _ref_forward(w, v, theta):
    W = _skew(w)
    I = jnp.eye(3, dtype=F32)
    WW = W @ W
    st, ct = jnp.sin(theta), jnp.cos(theta)
    R = I + st * W + (1.0 - ct) * WW
    T = (I * theta + (1.0 - ct) * W + (theta - st) * WW) @ v

    m = R.reshape(9)
    m00, m01, m02, m10, m11, m12, m20, m21, m22 = [m[i] for i in range(9)]
    q_abs = jnp.sqrt(jnp.maximum(jnp.stack([
        1.0 + m00 + m11 + m22,
        1.0 + m00 - m11 - m22,
        1.0 - m00 + m11 - m22,
        1.0 - m00 - m11 + m22,
    ]), 0.0))
    cand = jnp.stack([
        jnp.stack([q_abs[0] ** 2, m21 - m12, m02 - m20, m10 - m01]),
        jnp.stack([m21 - m12, q_abs[1] ** 2, m10 + m01, m02 + m20]),
        jnp.stack([m02 - m20, m10 + m01, q_abs[2] ** 2, m12 + m21]),
        jnp.stack([m10 - m01, m20 + m02, m21 + m12, q_abs[3] ** 2]),
    ]) / (2.0 * jnp.maximum(q_abs, 0.1)[:, None])
    out = cand[jnp.argmax(q_abs)]
    out = jnp.where(out[0] < 0, -out, out)
    q = out / jnp.maximum(jnp.linalg.norm(out), 1e-12)
    return R, T, q


if __name__ == "__main__":
    key = jax.random.PRNGKey(0)
    ks = jax.random.split(key, 6)

    # Pose 0: module-like init scale (torch.normal(0, 1e-6)); pose 1: O(1)
    # rotation/translation to exercise the full Rodrigues + quaternion path.
    B = 2
    w = jnp.stack([1e-6 * jax.random.normal(ks[0], (3,), F32),
                   0.7 * jax.random.normal(ks[1], (3,), F32)])
    v = jnp.stack([1e-6 * jax.random.normal(ks[2], (3,), F32),
                   0.7 * jax.random.normal(ks[3], (3,), F32)])
    theta = jnp.stack([1e-6 * jax.random.normal(ks[4], (), F32),
                       0.7 * jax.random.normal(ks[5], (), F32)])

    Rb, Tb, Qb = camera_transf_forward_batched(w, v, theta)
    jax.block_until_ready((Rb, Tb, Qb))
    assert Rb.shape == (B, 3, 3) and Tb.shape == (B, 3) and Qb.shape == (B, 4)

    for b in range(B):
        R_ref, T_ref, q_ref = _ref_forward(w[b], v[b], theta[b])
        assert jnp.allclose(Rb[b], R_ref, atol=1e-5), f"R mismatch at pose {b}"
        assert jnp.allclose(Tb[b], T_ref, atol=1e-5), f"T mismatch at pose {b}"
        assert jnp.allclose(Qb[b], q_ref, atol=1e-5), f"quat mismatch at pose {b}"

    # Single-pose API (matches the nn.Module forward signature/shapes).
    R1, T1, q1 = camera_transf_forward(w[0], v[0], theta[0])
    jax.block_until_ready((R1, T1, q1))
    assert R1.shape == (3, 3) and T1.shape == (3,) and q1.shape == (1, 4)
    R_ref, T_ref, q_ref = _ref_forward(w[0], v[0], theta[0])
    assert jnp.allclose(R1, R_ref, atol=1e-5)
    assert jnp.allclose(T1, T_ref, atol=1e-5)
    assert jnp.allclose(q1[0], q_ref, atol=1e-5)

    print("KERNEL_OK")
</pallas_src>

<mosaic_0001>
module attributes {stable_mosaic.version = 11 : i64} {
  func.func @_camera_transf_kernel(%arg0: i32, %arg1: memref<8x128xf32, #tpu.memory_space<vmem>>, %arg2: memref<16x128xf32, #tpu.memory_space<vmem>>) attributes {dimension_semantics = [#tpu.dimension_semantics<parallel>], iteration_bounds = array<i64: 1>, scalar_prefetch = 0 : i64, scratch_operands = 0 : i64, tpu.core_type = #tpu.core_type<tc>, window_params = [{transform_indices = @transform_0, window_bounds = array<i64: 8, 128>}, {transform_indices = @transform_1, window_bounds = array<i64: 16, 128>}]} {
    %c0 = arith.constant 0 : index
    %c0_0 = arith.constant 0 : index
    %0 = vector.load %arg1[%c0, %c0_0] : memref<8x128xf32, #tpu.memory_space<vmem>>, vector<1x128xf32>
    %c1 = arith.constant 1 : index
    %c0_1 = arith.constant 0 : index
    %1 = vector.load %arg1[%c1, %c0_1] : memref<8x128xf32, #tpu.memory_space<vmem>>, vector<1x128xf32>
    %c2 = arith.constant 2 : index
    %c0_2 = arith.constant 0 : index
    %2 = vector.load %arg1[%c2, %c0_2] : memref<8x128xf32, #tpu.memory_space<vmem>>, vector<1x128xf32>
    %c3 = arith.constant 3 : index
    %c0_3 = arith.constant 0 : index
    %3 = vector.load %arg1[%c3, %c0_3] : memref<8x128xf32, #tpu.memory_space<vmem>>, vector<1x128xf32>
    %c4 = arith.constant 4 : index
    %c0_4 = arith.constant 0 : index
    %4 = vector.load %arg1[%c4, %c0_4] : memref<8x128xf32, #tpu.memory_space<vmem>>, vector<1x128xf32>
    %c5 = arith.constant 5 : index
    %c0_5 = arith.constant 0 : index
    %5 = vector.load %arg1[%c5, %c0_5] : memref<8x128xf32, #tpu.memory_space<vmem>>, vector<1x128xf32>
    %c6 = arith.constant 6 : index
    %c0_6 = arith.constant 0 : index
    %6 = vector.load %arg1[%c6, %c0_6] : memref<8x128xf32, #tpu.memory_space<vmem>>, vector<1x128xf32>
    %7 = math.sin %6 : vector<1x128xf32>
    %8 = math.cos %6 : vector<1x128xf32>
    %cst = arith.constant 1.000000e+00 : f32
    %9 = vector.broadcast %cst : f32 to vector<1x128xf32>
    %10 = arith.subf %9, %8 : vector<1x128xf32>
    %11 = arith.subf %6, %7 : vector<1x128xf32>
    %12 = arith.mulf %0, %0 : vector<1x128xf32>
    %13 = arith.mulf %1, %1 : vector<1x128xf32>
    %14 = arith.addf %12, %13 : vector<1x128xf32>
    %15 = arith.mulf %2, %2 : vector<1x128xf32>
    %16 = arith.addf %14, %15 : vector<1x128xf32>
    %17 = arith.mulf %0, %0 : vector<1x128xf32>
    %18 = arith.subf %17, %16 : vector<1x128xf32>
    %19 = arith.mulf %10, %18 : vector<1x128xf32>
    %cst_7 = arith.constant 1.000000e+00 : f32
    %20 = vector.broadcast %cst_7 : f32 to vector<1x128xf32>
    %21 = arith.addf %20, %19 : vector<1x128xf32>
    %cst_8 = arith.constant 0.000000e+00 : f32
    %22 = vector.broadcast %cst_8 : f32 to vector<1x128xf32>
    %23 = arith.subf %22, %7 : vector<1x128xf32>
    %24 = arith.mulf %23, %2 : vector<1x128xf32>
    %25 = arith.mulf %0, %1 : vector<1x128xf32>
    %26 = arith.mulf %10, %25 : vector<1x128xf32>
    %27 = arith.addf %24, %26 : vector<1x128xf32>
    %28 = arith.mulf %7, %1 : vector<1x128xf32>
    %29 = arith.mulf %0, %2 : vector<1x128xf32>
    %30 = arith.mulf %10, %29 : vector<1x128xf32>
    %31 = arith.addf %28, %30 : vector<1x128xf32>
    %32 = arith.mulf %7, %2 : vector<1x128xf32>
    %33 = arith.mulf %1, %0 : vector<1x128xf32>
    %34 = arith.mulf %10, %33 : vector<1x128xf32>
    %35 = arith.addf %32, %34 : vector<1x128xf32>
    %36 = arith.mulf %1, %1 : vector<1x128xf32>
    %37 = arith.subf %36, %16 : vector<1x128xf32>
    %38 = arith.mulf %10, %37 : vector<1x128xf32>
    %cst_9 = arith.constant 1.000000e+00 : f32
    %39 = vector.broadcast %cst_9 : f32 to vector<1x128xf32>
    %40 = arith.addf %39, %38 : vector<1x128xf32>
    %cst_10 = arith.constant 0.000000e+00 : f32
    %41 = vector.broadcast %cst_10 : f32 to vector<1x128xf32>
    %42 = arith.subf %41, %7 : vector<1x128xf32>
    %43 = arith.mulf %42, %0 : vector<1x128xf32>
    %44 = arith.mulf %1, %2 : vector<1x128xf32>
    %45 = arith.mulf %10, %44 : vector<1x128xf32>
    %46 = arith.addf %43, %45 : vector<1x128xf32>
    %cst_11 = arith.constant 0.000000e+00 : f32
    %47 = vector.broadcast %cst_11 : f32 to vector<1x128xf32>
    %48 = arith.subf %47, %7 : vector<1x128xf32>
    %49 = arith.mulf %48, %1 : vector<1x128xf32>
    %50 = arith.mulf %2, %0 : vector<1x128xf32>
    %51 = arith.mulf %10, %50 : vector<1x128xf32>
    %52 = arith.addf %49, %51 : vector<1x128xf32>
    %53 = arith.mulf %7, %0 : vector<1x128xf32>
    %54 = arith.mulf %2, %1 : vector<1x128xf32>
    %55 = arith.mulf %10, %54 : vector<1x128xf32>
    %56 = arith.addf %53, %55 : vector<1x128xf32>
    %57 = arith.mulf %2, %2 : vector<1x128xf32>
    %58 = arith.subf %57, %16 : vector<1x128xf32>
    %59 = arith.mulf %10, %58 : vector<1x128xf32>
    %cst_12 = arith.constant 1.000000e+00 : f32
    %60 = vector.broadcast %cst_12 : f32 to vector<1x128xf32>
    %61 = arith.addf %60, %59 : vector<1x128xf32>
    %62 = arith.mulf %0, %3 : vector<1x128xf32>
    %63 = arith.mulf %1, %4 : vector<1x128xf32>
    %64 = arith.addf %62, %63 : vector<1x128xf32>
    %65 = arith.mulf %2, %5 : vector<1x128xf32>
    %66 = arith.addf %64, %65 : vector<1x128xf32>
    %67 = arith.mulf %1, %5 : vector<1x128xf32>
    %68 = arith.mulf %2, %4 : vector<1x128xf32>
    %69 = arith.subf %67, %68 : vector<1x128xf32>
    %70 = arith.mulf %2, %3 : vector<1x128xf32>
    %71 = arith.mulf %0, %5 : vector<1x128xf32>
    %72 = arith.subf %70, %71 : vector<1x128xf32>
    %73 = arith.mulf %0, %4 : vector<1x128xf32>
    %74 = arith.mulf %1, %3 : vector<1x128xf32>
    %75 = arith.subf %73, %74 : vector<1x128xf32>
    %76 = arith.mulf %6, %3 : vector<1x128xf32>
    %77 = arith.mulf %10, %69 : vector<1x128xf32>
    %78 = arith.addf %76, %77 : vector<1x128xf32>
    %79 = arith.mulf %0, %66 : vector<1x128xf32>
    %80 = arith.mulf %16, %3 : vector<1x128xf32>
    %81 = arith.subf %79, %80 : vector<1x128xf32>
    %82 = arith.mulf %11, %81 : vector<1x128xf32>
    %83 = arith.addf %78, %82 : vector<1x128xf32>
    %84 = arith.mulf %6, %4 : vector<1x128xf32>
    %85 = arith.mulf %10, %72 : vector<1x128xf32>
    %86 = arith.addf %84, %85 : vector<1x128xf32>
    %87 = arith.mulf %1, %66 : vector<1x128xf32>
    %88 = arith.mulf %16, %4 : vector<1x128xf32>
    %89 = arith.subf %87, %88 : vector<1x128xf32>
    %90 = arith.mulf %11, %89 : vector<1x128xf32>
    %91 = arith.addf %86, %90 : vector<1x128xf32>
    %92 = arith.mulf %6, %5 : vector<1x128xf32>
    %93 = arith.mulf %10, %75 : vector<1x128xf32>
    %94 = arith.addf %92, %93 : vector<1x128xf32>
    %95 = arith.mulf %2, %66 : vector<1x128xf32>
    %96 = arith.mulf %16, %5 : vector<1x128xf32>
    %97 = arith.subf %95, %96 : vector<1x128xf32>
    %98 = arith.mulf %11, %97 : vector<1x128xf32>
    %99 = arith.addf %94, %98 : vector<1x128xf32>
    %cst_13 = arith.constant 1.000000e+00 : f32
    %100 = vector.broadcast %cst_13 : f32 to vector<1x128xf32>
    %101 = arith.addf %100, %21 : vector<1x128xf32>
    %102 = arith.addf %101, %40 : vector<1x128xf32>
    %103 = arith.addf %102, %61 : vector<1x128xf32>
    %cst_14 = arith.constant 0.000000e+00 : f32
    %104 = vector.broadcast %cst_14 : f32 to vector<1x128xf32>
    %105 = arith.maximumf %103, %104 : vector<1x128xf32>
    %cst_15 = arith.constant 1.000000e+00 : f32
    %106 = vector.broadcast %cst_15 : f32 to vector<1x128xf32>
    %107 = arith.addf %106, %21 : vector<1x128xf32>
    %108 = arith.subf %107, %40 : vector<1x128xf32>
    %109 = arith.subf %108, %61 : vector<1x128xf32>
    %cst_16 = arith.constant 0.000000e+00 : f32
    %110 = vector.broadcast %cst_16 : f32 to vector<1x128xf32>
    %111 = arith.maximumf %109, %110 : vector<1x128xf32>
    %cst_17 = arith.constant 1.000000e+00 : f32
    %112 = vector.broadcast %cst_17 : f32 to vector<1x128xf32>
    %113 = arith.subf %112, %21 : vector<1x128xf32>
    %114 = arith.addf %113, %40 : vector<1x128xf32>
    %115 = arith.subf %114, %61 : vector<1x128xf32>
    %cst_18 = arith.constant 0.000000e+00 : f32
    %116 = vector.broadcast %cst_18 : f32 to vector<1x128xf32>
    %117 = arith.maximumf %115, %116 : vector<1x128xf32>
    %cst_19 = arith.constant 1.000000e+00 : f32
    %118 = vector.broadcast %cst_19 : f32 to vector<1x128xf32>
    %119 = arith.subf %118, %21 : vector<1x128xf32>
    %120 = arith.subf %119, %40 : vector<1x128xf32>
    %121 = arith.addf %120, %61 : vector<1x128xf32>
    %cst_20 = arith.constant 0.000000e+00 : f32
    %122 = vector.broadcast %cst_20 : f32 to vector<1x128xf32>
    %123 = arith.maximumf %121, %122 : vector<1x128xf32>
    %124 = math.sqrt %105 : vector<1x128xf32>
    %125 = math.sqrt %111 : vector<1x128xf32>
    %126 = math.sqrt %117 : vector<1x128xf32>
    %127 = math.sqrt %123 : vector<1x128xf32>
    %cst_21 = arith.constant 1.000000e-01 : f32
    %128 = vector.broadcast %cst_21 : f32 to vector<1x128xf32>
    %129 = arith.maximumf %124, %128 : vector<1x128xf32>
    %cst_22 = arith.constant 2.000000e+00 : f32
    %130 = vector.broadcast %cst_22 : f32 to vector<1x128xf32>
    %131 = arith.mulf %130, %129 : vector<1x128xf32>
    %132 = tpu.reciprocal %131 {approx = true} : vector<1x128xf32> -> vector<1x128xf32>
    %cst_23 = arith.constant 1.000000e-01 : f32
    %133 = vector.broadcast %cst_23 : f32 to vector<1x128xf32>
    %134 = arith.maximumf %125, %133 : vector<1x128xf32>
    %cst_24 = arith.constant 2.000000e+00 : f32
    %135 = vector.broadcast %cst_24 : f32 to vector<1x128xf32>
    %136 = arith.mulf %135, %134 : vector<1x128xf32>
    %137 = tpu.reciprocal %136 {approx = true} : vector<1x128xf32> -> vector<1x128xf32>
    %cst_25 = arith.constant 1.000000e-01 : f32
    %138 = vector.broadcast %cst_25 : f32 to vector<1x128xf32>
    %139 = arith.maximumf %126, %138 : vector<1x128xf32>
    %cst_26 = arith.constant 2.000000e+00 : f32
    %140 = vector.broadcast %cst_26 : f32 to vector<1x128xf32>
    %141 = arith.mulf %140, %139 : vector<1x128xf32>
    %142 = tpu.reciprocal %141 {approx = true} : vector<1x128xf32> -> vector<1x128xf32>
    %cst_27 = arith.constant 1.000000e-01 : f32
    %143 = vector.broadcast %cst_27 : f32 to vector<1x128xf32>
    %144 = arith.maximumf %127, %143 : vector<1x128xf32>
    %cst_28 = arith.constant 2.000000e+00 : f32
    %145 = vector.broadcast %cst_28 : f32 to vector<1x128xf32>
    %146 = arith.mulf %145, %144 : vector<1x128xf32>
    %147 = tpu.reciprocal %146 {approx = true} : vector<1x128xf32> -> vector<1x128xf32>
    %148 = arith.mulf %105, %132 : vector<1x128xf32>
    %149 = arith.subf %56, %46 : vector<1x128xf32>
    %150 = arith.mulf %149, %132 : vector<1x128xf32>
    %151 = arith.subf %31, %52 : vector<1x128xf32>
    %152 = arith.mulf %151, %132 : vector<1x128xf32>
    %153 = arith.subf %35, %27 : vector<1x128xf32>
    %154 = arith.mulf %153, %132 : vector<1x128xf32>
    %155 = arith.subf %56, %46 : vector<1x128xf32>
    %156 = arith.mulf %155, %137 : vector<1x128xf32>
    %157 = arith.mulf %111, %137 : vector<1x128xf32>
    %158 = arith.addf %35, %27 : vector<1x128xf32>
    %159 = arith.mulf %158, %137 : vector<1x128xf32>
    %160 = arith.addf %31, %52 : vector<1x128xf32>
    %161 = arith.mulf %160, %137 : vector<1x128xf32>
    %162 = arith.subf %31, %52 : vector<1x128xf32>
    %163 = arith.mulf %162, %142 : vector<1x128xf32>
    %164 = arith.addf %35, %27 : vector<1x128xf32>
    %165 = arith.mulf %164, %142 : vector<1x128xf32>
    %166 = arith.mulf %117, %142 : vector<1x128xf32>
    %167 = arith.addf %46, %56 : vector<1x128xf32>
    %168 = arith.mulf %167, %142 : vector<1x128xf32>
    %169 = arith.subf %35, %27 : vector<1x128xf32>
    %170 = arith.mulf %169, %147 : vector<1x128xf32>
    %171 = arith.addf %52, %31 : vector<1x128xf32>
    %172 = arith.mulf %171, %147 : vector<1x128xf32>
    %173 = arith.addf %56, %46 : vector<1x128xf32>
    %174 = arith.mulf %173, %147 : vector<1x128xf32>
    %175 = arith.mulf %123, %147 : vector<1x128xf32>
    %176 = arith.cmpf oge, %124, %125 : vector<1x128xf32>
    %177 = arith.cmpf oge, %124, %126 : vector<1x128xf32>
    %178 = arith.andi %176, %177 : vector<1x128xi1>
    %179 = arith.cmpf oge, %124, %127 : vector<1x128xf32>
    %180 = arith.andi %178, %179 : vector<1x128xi1>
    %cst_29 = arith.constant dense<true> : vector<1x128xi1>
    %181 = arith.xori %180, %cst_29 : vector<1x128xi1>
    %182 = arith.cmpf oge, %125, %126 : vector<1x128xf32>
    %183 = arith.andi %181, %182 : vector<1x128xi1>
    %184 = arith.cmpf oge, %125, %127 : vector<1x128xf32>
    %185 = arith.andi %183, %184 : vector<1x128xi1>
    %cst_30 = arith.constant dense<true> : vector<1x128xi1>
    %186 = arith.xori %180, %cst_30 : vector<1x128xi1>
    %cst_31 = arith.constant dense<true> : vector<1x128xi1>
    %187 = arith.xori %185, %cst_31 : vector<1x128xi1>
    %188 = arith.andi %186, %187 : vector<1x128xi1>
    %189 = arith.cmpf oge, %126, %127 : vector<1x128xf32>
    %190 = arith.andi %188, %189 : vector<1x128xi1>
    %191 = arith.select %190, %163, %170 : vector<1x128xi1>, vector<1x128xf32>
    %192 = arith.select %185, %156, %191 : vector<1x128xi1>, vector<1x128xf32>
    %193 = arith.select %180, %148, %192 : vector<1x128xi1>, vector<1x128xf32>
    %194 = arith.select %190, %165, %172 : vector<1x128xi1>, vector<1x128xf32>
    %195 = arith.select %185, %157, %194 : vector<1x128xi1>, vector<1x128xf32>
    %196 = arith.select %180, %150, %195 : vector<1x128xi1>, vector<1x128xf32>
    %197 = arith.select %190, %166, %174 : vector<1x128xi1>, vector<1x128xf32>
    %198 = arith.select %185, %159, %197 : vector<1x128xi1>, vector<1x128xf32>
    %199 = arith.select %180, %152, %198 : vector<1x128xi1>, vector<1x128xf32>
    %200 = arith.select %190, %168, %175 : vector<1x128xi1>, vector<1x128xf32>
    %201 = arith.select %185, %161, %200 : vector<1x128xi1>, vector<1x128xf32>
    %202 = arith.select %180, %154, %201 : vector<1x128xi1>, vector<1x128xf32>
    %cst_32 = arith.constant 0.000000e+00 : f32
    %203 = vector.broadcast %cst_32 : f32 to vector<1x128xf32>
    %204 = arith.cmpf olt, %193, %203 : vector<1x128xf32>
    %cst_33 = arith.constant 0.000000e+00 : f32
    %205 = vector.broadcast %cst_33 : f32 to vector<1x128xf32>
    %206 = arith.subf %205, %193 : vector<1x128xf32>
    %207 = arith.select %204, %206, %193 : vector<1x128xi1>, vector<1x128xf32>
    %cst_34 = arith.constant 0.000000e+00 : f32
    %208 = vector.broadcast %cst_34 : f32 to vector<1x128xf32>
    %209 = arith.subf %208, %196 : vector<1x128xf32>
    %210 = arith.select %204, %209, %196 : vector<1x128xi1>, vector<1x128xf32>
    %cst_35 = arith.constant 0.000000e+00 : f32
    %211 = vector.broadcast %cst_35 : f32 to vector<1x128xf32>
    %212 = arith.subf %211, %199 : vector<1x128xf32>
    %213 = arith.select %204, %212, %199 : vector<1x128xi1>, vector<1x128xf32>
    %cst_36 = arith.constant 0.000000e+00 : f32
    %214 = vector.broadcast %cst_36 : f32 to vector<1x128xf32>
    %215 = arith.subf %214, %202 : vector<1x128xf32>
    %216 = arith.select %204, %215, %202 : vector<1x128xi1>, vector<1x128xf32>
    %217 = arith.mulf %207, %207 : vector<1x128xf32>
    %218 = arith.mulf %210, %210 : vector<1x128xf32>
    %219 = arith.addf %217, %218 : vector<1x128xf32>
    %220 = arith.mulf %213, %213 : vector<1x128xf32>
    %221 = arith.addf %219, %220 : vector<1x128xf32>
    %222 = arith.mulf %216, %216 : vector<1x128xf32>
    %223 = arith.addf %221, %222 : vector<1x128xf32>
    %cst_37 = arith.constant 1.000000e-24 : f32
    %224 = vector.broadcast %cst_37 : f32 to vector<1x128xf32>
    %225 = arith.maximumf %223, %224 : vector<1x128xf32>
    %226 = math.rsqrt %225 : vector<1x128xf32>
    %227 = arith.mulf %207, %226 : vector<1x128xf32>
    %228 = arith.mulf %210, %226 : vector<1x128xf32>
    %229 = arith.mulf %213, %226 : vector<1x128xf32>
    %230 = arith.mulf %216, %226 : vector<1x128xf32>
    %231 = tpu.iota {dimensions = array<i32: 0>} : vector<16x128xi32>
    %cst_38 = arith.constant 0.000000e+00 : f32
    %232 = vector.broadcast %cst_38 : f32 to vector<16x128xf32>
    %c0_i32 = arith.constant 0 : i32
    %233 = vector.broadcast %c0_i32 : i32 to vector<16x128xi32>
    %234 = arith.cmpi eq, %231, %233 : vector<16x128xi32>
    %235 = vector.shape_cast %21 : vector<1x128xf32> to vector<1x128xf32>
    %236 = vector.broadcast %235 : vector<1x128xf32> to vector<16x128xf32>
    %237 = arith.select %234, %236, %232 : vector<16x128xi1>, vector<16x128xf32>
    %c1_i32 = arith.constant 1 : i32
    %238 = vector.broadcast %c1_i32 : i32 to vector<16x128xi32>
    %239 = arith.cmpi eq, %231, %238 : vector<16x128xi32>
    %240 = vector.shape_cast %27 : vector<1x128xf32> to vector<1x128xf32>
    %241 = vector.broadcast %240 : vector<1x128xf32> to vector<16x128xf32>
    %242 = arith.select %239, %241, %237 : vector<16x128xi1>, vector<16x128xf32>
    %c2_i32 = arith.constant 2 : i32
    %243 = vector.broadcast %c2_i32 : i32 to vector<16x128xi32>
    %244 = arith.cmpi eq, %231, %243 : vector<16x128xi32>
    %245 = vector.shape_cast %31 : vector<1x128xf32> to vector<1x128xf32>
    %246 = vector.broadcast %245 : vector<1x128xf32> to vector<16x128xf32>
    %247 = arith.select %244, %246, %242 : vector<16x128xi1>, vector<16x128xf32>
    %c3_i32 = arith.constant 3 : i32
    %248 = vector.broadcast %c3_i32 : i32 to vector<16x128xi32>
    %249 = arith.cmpi eq, %231, %248 : vector<16x128xi32>
    %250 = vector.shape_cast %35 : vector<1x128xf32> to vector<1x128xf32>
    %251 = vector.broadcast %250 : vector<1x128xf32> to vector<16x128xf32>
    %252 = arith.select %249, %251, %247 : vector<16x128xi1>, vector<16x128xf32>
    %c4_i32 = arith.constant 4 : i32
    %253 = vector.broadcast %c4_i32 : i32 to vector<16x128xi32>
    %254 = arith.cmpi eq, %231, %253 : vector<16x128xi32>
    %255 = vector.shape_cast %40 : vector<1x128xf32> to vector<1x128xf32>
    %256 = vector.broadcast %255 : vector<1x128xf32> to vector<16x128xf32>
    %257 = arith.select %254, %256, %252 : vector<16x128xi1>, vector<16x128xf32>
    %c5_i32 = arith.constant 5 : i32
    %258 = vector.broadcast %c5_i32 : i32 to vector<16x128xi32>
    %259 = arith.cmpi eq, %231, %258 : vector<16x128xi32>
    %260 = vector.shape_cast %46 : vector<1x128xf32> to vector<1x128xf32>
    %261 = vector.broadcast %260 : vector<1x128xf32> to vector<16x128xf32>
    %262 = arith.select %259, %261, %257 : vector<16x128xi1>, vector<16x128xf32>
    %c6_i32 = arith.constant 6 : i32
    %263 = vector.broadcast %c6_i32 : i32 to vector<16x128xi32>
    %264 = arith.cmpi eq, %231, %263 : vector<16x128xi32>
    %265 = vector.shape_cast %52 : vector<1x128xf32> to vector<1x128xf32>
    %266 = vector.broadcast %265 : vector<1x128xf32> to vector<16x128xf32>
    %267 = arith.select %264, %266, %262 : vector<16x128xi1>, vector<16x128xf32>
    %c7_i32 = arith.constant 7 : i32
    %268 = vector.broadcast %c7_i32 : i32 to vector<16x128xi32>
    %269 = arith.cmpi eq, %231, %268 : vector<16x128xi32>
    %270 = vector.shape_cast %56 : vector<1x128xf32> to vector<1x128xf32>
    %271 = vector.broadcast %270 : vector<1x128xf32> to vector<16x128xf32>
    %272 = arith.select %269, %271, %267 : vector<16x128xi1>, vector<16x128xf32>
    %c8_i32 = arith.constant 8 : i32
    %273 = vector.broadcast %c8_i32 : i32 to vector<16x128xi32>
    %274 = arith.cmpi eq, %231, %273 : vector<16x128xi32>
    %275 = vector.shape_cast %61 : vector<1x128xf32> to vector<1x128xf32>
    %276 = vector.broadcast %275 : vector<1x128xf32> to vector<16x128xf32>
    %277 = arith.select %274, %276, %272 : vector<16x128xi1>, vector<16x128xf32>
    %c9_i32 = arith.constant 9 : i32
    %278 = vector.broadcast %c9_i32 : i32 to vector<16x128xi32>
    %279 = arith.cmpi eq, %231, %278 : vector<16x128xi32>
    %280 = vector.shape_cast %83 : vector<1x128xf32> to vector<1x128xf32>
    %281 = vector.broadcast %280 : vector<1x128xf32> to vector<16x128xf32>
    %282 = arith.select %279, %281, %277 : vector<16x128xi1>, vector<16x128xf32>
    %c10_i32 = arith.constant 10 : i32
    %283 = vector.broadcast %c10_i32 : i32 to vector<16x128xi32>
    %284 = arith.cmpi eq, %231, %283 : vector<16x128xi32>
    %285 = vector.shape_cast %91 : vector<1x128xf32> to vector<1x128xf32>
    %286 = vector.broadcast %285 : vector<1x128xf32> to vector<16x128xf32>
    %287 = arith.select %284, %286, %282 : vector<16x128xi1>, vector<16x128xf32>
    %c11_i32 = arith.constant 11 : i32
    %288 = vector.broadcast %c11_i32 : i32 to vector<16x128xi32>
    %289 = arith.cmpi eq, %231, %288 : vector<16x128xi32>
    %290 = vector.shape_cast %99 : vector<1x128xf32> to vector<1x128xf32>
    %291 = vector.broadcast %290 : vector<1x128xf32> to vector<16x128xf32>
    %292 = arith.select %289, %291, %287 : vector<16x128xi1>, vector<16x128xf32>
    %c12_i32 = arith.constant 12 : i32
    %293 = vector.broadcast %c12_i32 : i32 to vector<16x128xi32>
    %294 = arith.cmpi eq, %231, %293 : vector<16x128xi32>
    %295 = vector.shape_cast %227 : vector<1x128xf32> to vector<1x128xf32>
    %296 = vector.broadcast %295 : vector<1x128xf32> to vector<16x128xf32>
    %297 = arith.select %294, %296, %292 : vector<16x128xi1>, vector<16x128xf32>
    %c13_i32 = arith.constant 13 : i32
    %298 = vector.broadcast %c13_i32 : i32 to vector<16x128xi32>
    %299 = arith.cmpi eq, %231, %298 : vector<16x128xi32>
    %300 = vector.shape_cast %228 : vector<1x128xf32> to vector<1x128xf32>
    %301 = vector.broadcast %300 : vector<1x128xf32> to vector<16x128xf32>
    %302 = arith.select %299, %301, %297 : vector<16x128xi1>, vector<16x128xf32>
    %c14_i32 = arith.constant 14 : i32
    %303 = vector.broadcast %c14_i32 : i32 to vector<16x128xi32>
    %304 = arith.cmpi eq, %231, %303 : vector<16x128xi32>
    %305 = vector.shape_cast %229 : vector<1x128xf32> to vector<1x128xf32>
    %306 = vector.broadcast %305 : vector<1x128xf32> to vector<16x128xf32>
    %307 = arith.select %304, %306, %302 : vector<16x128xi1>, vector<16x128xf32>
    %c15_i32 = arith.constant 15 : i32
    %308 = vector.broadcast %c15_i32 : i32 to vector<16x128xi32>
    %309 = arith.cmpi eq, %231, %308 : vector<16x128xi32>
    %310 = vector.shape_cast %230 : vector<1x128xf32> to vector<1x128xf32>
    %311 = vector.broadcast %310 : vector<1x128xf32> to vector<16x128xf32>
    %312 = arith.select %309, %311, %307 : vector<16x128xi1>, vector<16x128xf32>
    %c0_39 = arith.constant 0 : index
    %c0_40 = arith.constant 0 : index
    %313 = vector.load %arg2[%c0_39, %c0_40] : memref<16x128xf32, #tpu.memory_space<vmem>>, vector<16x128xf32>
    tpu.vector_store %arg2[%c0_39, %c0_40], %312 {strides = array<i32>} : memref<16x128xf32, #tpu.memory_space<vmem>>, vector<16x128xf32>,
    return
  }
  func.func @transform_0(%arg0: i32) -> (i32, i32) {
    %c0_i32 = arith.constant 0 : i32
    %c0_i32_0 = arith.constant 0 : i32
    return %c0_i32, %arg0 : i32, i32
  }
  func.func @transform_1(%arg0: i32) -> (i32, i32) {
    %c0_i32 = arith.constant 0 : i32
    %c0_i32_0 = arith.constant 0 : i32
    return %c0_i32, %arg0 : i32, i32
  }
}

</mosaic_0001>

<bundles_post_ra>
// kernel: tpu_custom_call.1
= control target key start
LH: loop header
LB: loop body
LE: loop exit
PB: predicated region body
PF: predicated region fallthrough
CT: control target
= control target key end

     0   :  { %6 = vsyncpa [#allocation3], 0  ;;  %s1121_s0 = inlined_call_operand.hbm [shape: f32[8,128], index: 0, kind: input, shape index: {}]   ;;  %s1122_s1 = inlined_call_operand.hbm [shape: f32[16,128], index: 1, kind: output, shape index: {}]  }
   0x1   :  { %7 = vsyncpa [#allocation4], 0  ;;  %s13_s8 = sshll.u32 %s1121_s0, 4  ;;  %s757_s9 = smov [#allocation2]   ;;  %s14_s8 = int_to_ptr.hbm [resolvable:$true] %s13_s8 }
   0x2   :  { %s15_s10 = sshll.u32 %s757_s9, 4  ;;  %s16_s10 = int_to_ptr.vmem [resolvable:$true] %s15_s10 }
   0x3   :  { %18 = dma.hbm_to_vmem [thread:$0]  %s14_s8, 128, %s16_s10, [#allocation3]  }
   0x4   :  { %753 = dma.done.wait [#allocation3], 128  }
   0x5   :  { %754 = vsyncadd [#allocation3], 4294967168  ;;  %v782_v0 = vld [vmem:[#allocation2 + $0x6] sm:$0x1]  ;;  %v758_v12 = vmov 683565275  }
   0x6   :  { %v33_v1 = vand.u32 2139095040, %v782_v0  ;;  %v30_v3 = vand.u32 2147483647, %v782_v0  ;;  %v759_v14 = vmov 2475754826   ;;  %vm32_vm12 = vcmp.lt.s32.totalorder %v782_v0, 0 }
   0x7   :  { %v760_v16 = vmov 2131351028   ;;  %v761_v18 = vmov 2102212464   ;;  %v762_v20 = vmov 920167782  }
   0x8   :  { %v34_v2 = vshrl.u32 %v33_v1, 23  ;;  %v37_v6 = vand.u32 8388607, %v30_v3  ;;  %v763_v26 = vmov 1326507024   ;;  %v764_v1 = vmov 0  }
   0x9   :  { %vm852_vm13 = vcmp.le.f32.partialorder %v30_v3, 0.7853982  ;;  %s766_s0 = smov [#allocation5]   ;;  %s656_s14 = sshll.u32 %s1122_s1, 4  ;;  %s657_s14 = int_to_ptr.hbm [resolvable:$true] %s656_s14 }
   0xa   :  { %v669_v4 = vadd.s32 4294967169, %v34_v2  ;;  %v38_v9 = vor.u32 8388608, %v37_v6  ;;  %s654_s11 = sshll.u32 %s766_s0, 4  ;;  %s767_s15 = smov 128   ;;  %s655_s11 = int_to_ptr.vmem [resolvable:$true] %s654_s11 }
   0xb   :  { %s768_s16 = smov 8  }
   0xc   :  { %v40_v5 = vadd.s32 1, %v669_v4  ;;  %v791_v28 = vshll.u32 %v38_v9, 8 }
   0xe   :  { %vm41_vm0 = vcmp.gt.s32.totalorder %v40_v5, 0  ;;  %v79_v40 = vand.u32 65535, %v791_v28  ;;  %v80_v41 = vshrl.u32 %v791_v28, 16 }
   0xf   :  { %v42_v7 = vsel %vm41_vm0, %v40_v5, 0 }
  0x10   :  { %v44_v8 = vand.u32 31, %v42_v7  ;;  %v788_v10 = vshrl.u32 %v42_v7, 5 }
  0x12   :  { %v45_v11 = vsub.s32 32, %v44_v8  ;;  %v47_v13 = vshll.u32 %v758_v12, %v44_v8  ;;  %v50_v15 = vshll.u32 %v759_v14, %v44_v8  ;;  %v53_v17 = vshll.u32 %v760_v16, %v44_v8 }
  0x13   :  { %v56_v19 = vshll.u32 %v761_v18, %v44_v8  ;;  %v59_v21 = vshll.u32 %v762_v20, %v44_v8  ;;  %vm62_vm1 = vcmp.lt.s32.totalorder %v788_v10, 1  ;;  %vm65_vm2 = vcmp.lt.s32.totalorder %v788_v10, 4 }
  0x14   :  { %v48_v22 = vshrl.u32 %v759_v14, %v45_v11  ;;  %v51_v23 = vshrl.u32 %v760_v16, %v45_v11  ;;  %v54_v24 = vshrl.u32 %v761_v18, %v45_v11  ;;  %v57_v25 = vshrl.u32 %v762_v20, %v45_v11 }
  0x15   :  { %v60_v27 = vshrl.u32 %v763_v26, %v45_v11  ;;  %vm64_vm3 = vcmp.lt.s32.totalorder %v788_v10, 3  ;;  %vm63_vm4 = vcmp.lt.s32.totalorder %v788_v10, 2  ;;  %v46_v48 = vshrl.u32 %v758_v12, %v45_v11 }
  0x16   :  { %v49_v29 = vor.u32 %v48_v22, %v47_v13  ;;  %v52_v30 = vor.u32 %v51_v23, %v50_v15  ;;  %v55_v31 = vor.u32 %v54_v24, %v53_v17  ;;  %v58_v32 = vor.u32 %v57_v25, %v56_v19 }
  0x17   :  { %v61_v33 = vor.u32 %v60_v27, %v59_v21 }
  0x18   :  { %v70_v34 = vsel %vm62_vm1, %v49_v29, %v52_v30  ;;  %v74_v35 = vsel %vm62_vm1, %v52_v30, %v55_v31  ;;  %v71_v36 = vsel %vm65_vm2, %v58_v32, 920167782  ;;  %v66_v61 = vsel %vm62_vm1, %v46_v48, %v49_v29  ;;  %v835_v48 = vld [vmem:[#allocation2 + $0x2] sm:$0x1] }
  0x19   :  { %v75_v37 = vsel %vm65_vm2, %v61_v33, 1326507024  ;;  %v72_v38 = vsel %vm64_vm3, %v55_v31, %v71_v36  ;;  %v67_v63 = vsel %vm65_vm2, %v55_v31, 2102212464 }
  0x1a   :  { %v76_v39 = vsel %vm64_vm3, %v58_v32, %v75_v37  ;;  %v73_v42 = vsel %vm63_vm4, %v70_v34, %v72_v38  ;;  %v68_v12 = vsel %vm64_vm3, %v52_v30, %v67_v63 }
  0x1b   :  { %v77_v43 = vsel %vm63_vm4, %v74_v35, %v76_v39  ;;  %v103_v46 = vand.u32 65535, %v73_v42  ;;  %v104_v47 = vshrl.u32 %v73_v42, 16  ;;  %v69_v20 = vsel %vm63_vm4, %v66_v61, %v68_v12 }
  0x1c   :  { %v81_v44 = vand.u32 65535, %v77_v43  ;;  %v82_v45 = vshrl.u32 %v77_v43, 16  ;;  %v123_v24 = vmul.u32 %v791_v28, %v69_v20  ;;  %v823_v28 = vld [vmem:[#allocation2] sm:$0x1]  ;;  %vm173_vm4 = vweird.f32 %v782_v0 }
  0x1d   :  { %v105_v52 = vmul.u32 %v103_v46, %v79_v40  ;;  %v106_v53 = vmul.u32 %v104_v47, %v79_v40  ;;  %v107_v54 = vmul.u32 %v103_v46, %v80_v41  ;;  %v108_v58 = vmul.u32 %v104_v47, %v80_v41 }
  0x1e   :  { %v83_v49 = vmul.u32 %v81_v44, %v79_v40  ;;  %v84_v50 = vmul.u32 %v82_v45, %v79_v40  ;;  %v85_v51 = vmul.u32 %v81_v44, %v80_v41  ;;  %v86_v55 = vmul.u32 %v82_v45, %v80_v41  ;;  %v825_v41 = vld [vmem:[#allocation2 + $0x1] sm:$0x1] }
  0x1f   :  { %v109_v59 = vshll.u32 %v106_v53, 16  ;;  %v111_v60 = vshll.u32 %v107_v54, 16  ;;  %v110_v9 = vshrl.u32 %v106_v53, 16  ;;  %v112_v16 = vshrl.u32 %v107_v54, 16  ;;  %v843_v54 = vld [vmem:[#allocation2 + $0x3] sm:$0x1] }
  0x20   :  { %v87_v56 = vshll.u32 %v84_v50, 16  ;;  %v89_v57 = vshll.u32 %v85_v51, 16  ;;  %v88_v5 = vshrl.u32 %v84_v50, 16  ;;  %v90_v13 = vshrl.u32 %v85_v51, 16 }
  0x21   :  { %vm113_vm6 = vc.u32 %v105_v52, %v109_v59  ;;  %v115_v4 = vadd.s32 %v109_v59, %v105_v52  ;;  %v829_v46 = vmul.f32 %v823_v28, %v823_v28  ;;  %v833_v47 = vmul.f32 %v825_v41, %v825_v41 }
  0x22   :  { %vm91_vm5 = vc.u32 %v83_v49, %v87_v56  ;;  %v93_v62 = vadd.s32 %v87_v56, %v83_v49  ;;  %v114_v7 = vsel %vm113_vm6, 1, %v764_v1  ;;  %v841_v53 = vmul.f32 %v835_v48, %v835_v48  ;;  %v847_v56 = vld [vmem:[#allocation2 + $0x5] sm:$0x1] }
  0x23   :  { %v92_v2 = vsel %vm91_vm5, 1, %v764_v1  ;;  %v116_v11 = vadd.s32 %v114_v7, %v108_v58  ;;  %vm117_vm8 = vc.u32 %v115_v4, %v111_v60  ;;  %v119_v19 = vadd.s32 %v115_v4, %v111_v60 }
  0x24   :  { %v94_v6 = vadd.s32 %v92_v2, %v86_v55  ;;  %vm95_vm7 = vc.u32 %v93_v62, %v89_v57  ;;  %v118_v15 = vsel %vm117_vm8, 1, %v764_v1  ;;  %v343_v52 = vadd.f32 %v833_v47, %v829_v46  ;;  %v845_v55 = vld [vmem:[#allocation2 + $0x4] sm:$0x1] }
  0x25   :  { %v96_v8 = vsel %vm95_vm7, 1, %v764_v1  ;;  %v120_v17 = vadd.s32 %v118_v15, %v116_v11  ;;  %v374_v62 = vmul.f32 %v843_v54, %v823_v28  ;;  %v375_v63 = vmul.f32 %v845_v55, %v825_v41 }
  0x26   :  { %v98_v14 = vadd.s32 %v96_v8, %v94_v6  ;;  %v857_v61 = vadd.f32 %v841_v53, %v343_v52  ;;  %v377_v1 = vmul.f32 %v847_v56, %v835_v48  ;;  %v867_v3 = vmul.f32 %v847_v56, %v825_v41 }
  0x27   :  { %v121_v21 = vadd.s32 %v120_v17, %v110_v9  ;;  %v873_v4 = vmul.f32 %v845_v55, %v835_v48  ;;  %v881_v6 = vmul.f32 %v847_v56, %v823_v28  ;;  %v376_v8 = vadd.f32 %v375_v63, %v374_v62 }
  0x28   :  { %v99_v18 = vadd.s32 %v98_v14, %v88_v5  ;;  %v877_v5 = vmul.f32 %v843_v54, %v835_v48  ;;  %v888_v9 = vmul.f32 %v845_v55, %v823_v28  ;;  %v892_v11 = vmul.f32 %v843_v54, %v825_v41 }
  0x29   :  { %v122_v23 = vadd.s32 %v121_v21, %v112_v16  ;;  %v378_v16 = vadd.f32 %v377_v1, %v376_v8  ;;  %v400_v21 = vmul.f32 %v857_v61, %v845_v55  ;;  %v360_v63 = vsub.f32 %v833_v47, %v857_v61 }
  0x2a   :  { %v100_v22 = vadd.s32 %v99_v18, %v90_v13  ;;  %v381_v13 = vsub.f32 %v867_v3, %v873_v4  ;;  %v384_v14 = vsub.f32 %v877_v5, %v881_v6  ;;  %v387_v17 = vsub.f32 %v888_v9, %v892_v11 }
  0x2b   :  { %v126_v25 = vadd.s32 1, %v122_v23  ;;  %v392_v18 = vmul.f32 %v857_v61, %v843_v54  ;;  %v371_v5 = vsub.f32 %v841_v53, %v857_v61  ;;  %v396_v47 = vmul.f32 %v782_v0, %v845_v55 }
  0x2c   :  { %vm125_vm9 = vc.u32 %v100_v22, %v119_v19  ;;  %v124_v10 = vadd.s32 %v119_v19, %v100_v22  ;;  %v391_v22 = vmul.f32 %v378_v16, %v823_v28  ;;  %v404_v9 = vmul.f32 %v782_v0, %v847_v56 }
  0x2d   :  { %v127_v26 = vsel %vm125_vm9, %v126_v25, %v122_v23  ;;  %v399_v23 = vmul.f32 %v378_v16, %v825_v41  ;;  %v408_v25 = vmul.f32 %v857_v61, %v847_v56 }
  0x2e   :  { %v128_v27 = vadd.s32 %v127_v26, %v123_v24  ;;  %v407_v24 = vmul.f32 %v378_v16, %v835_v48 }
  0x30   :  { %v129_v29 = vadd.s32 536870912, %v128_v27 }
  0x32   :  { %v130_v30 = vshrl.u32 %v129_v29, 30 }
  0x34   :  { %v131_v31 = vshll.u32 %v130_v30, 30  ;;  %v154_v60 = vsub.s32 4, %v130_v30 }
  0x36   :  { %v132_v32 = vsub.s32 %v128_v27, %v131_v31  ;;  %v155_v15 = vsel %vm32_vm12, %v154_v60, %v130_v30  ;;  %v393_v31 = vsub.f32 %v391_v22, %v392_v18  ;;  %v346_v60 = vsub.f32 %v829_v46, %v857_v61 }
  0x37   :  { %v157_v26 = vsel %vm852_vm13, 0, %v155_v15  ;;  %v388_v46 = vmul.f32 %v782_v0, %v843_v54 }
  0x38   :  { %vm133_vm10 = vcmp.lt.s32.totalorder %v132_v32, 0  ;;  %v134_v33 = vsub.s32 0, %v132_v32  ;;  %v174_v30 = vadd.s32 3, %v157_v26 }
  0x3a   :  { %v135_v34 = vsel %vm133_vm10, %v134_v33, %v132_v32  ;;  %v409_v33 = vsub.f32 %v407_v24, %v408_v25 }
  0x3b   :  { %v136_v35 = vclz %v135_v34 }
  0x3d   :  { %v670_v36 = vadd.s32 4294967294, %v136_v35 }
  0x3f   :  { %vm671_vm11 = vcmp.lt.s32.totalorder %v670_v36, 0 }
  0x40   :  { %v139_v37 = vsel %vm671_vm11, 0, %v670_v36 }
  0x41   :  { %v140_v38 = vsub.s32 32, %v139_v37  ;;  %v141_v39 = vshll.u32 %v132_v32, %v139_v37  ;;  %v144_v40 = vsub.s32 4294967266, %v139_v37  ;;  %v401_v32 = vsub.f32 %v399_v23, %v400_v21 }
  0x42   :  { %v175_v37 = vand.u32 3, %v174_v30 }
  0x43   :  { %v142_v42 = vshrl.u32 %v124_v10, %v140_v38  ;;  %v145_v43 = vadd.s32 127, %v144_v40  ;;  %v329_v38 = vand.u32 3, %v157_v26 }
  0x44   :  { %vm180_vm14 = vcmp.eq.s32.totalorder %v175_v37, 2  ;;  %vm176_vm0 = vcmp.lt.s32.totalorder %v175_v37, 2  ;;  %vm177_vm1 = vcmp.eq.s32.totalorder %v175_v37, 0 }
  0x45   :  { %v143_v44 = vor.u32 %v142_v42, %v141_v39  ;;  %v146_v45 = vshll.u32 %v145_v43, 23  ;;  %vm334_vm15 = vcmp.eq.s32.totalorder %v329_v38, 2  ;;  %vm331_vm2 = vcmp.eq.s32.totalorder %v329_v38, 0 }
  0x46   :  { %vm330_vm3 = vcmp.lt.s32.totalorder %v329_v38, 2 }
  0x47   :  { %v147_v49 = vor.u32 4788187, %v146_v45  ;;  %v150_v50 = vcvt.s32.f32 %v143_v44 }
  0x49   :  { %v148_v51 = vand.u32 2147483647, %v147_v49 }
  0x4b   :  { %v151_v57 = vmul.f32 %v150_v50, %v148_v51 }
  0x4d   :  { %v152_v59 = vxor.u32 2147483648, %v151_v57 }
  0x4f   :  { %v153_v2 = vsel %vm32_vm12, %v152_v59, %v151_v57 }
  0x50   :  { %v156_v7 = vsel %vm852_vm13, %v782_v0, %v153_v2 }
  0x51   :  { %v158_v12 = vmul.f32 %v156_v7, %v156_v7 }
  0x53   :  { %v159_v19 = vmul.f32 -0.001358992, %v158_v12  ;;  %v166_v20 = vmul.f32 -0.00019511016, %v158_v12 }
  0x55   :  { %v160_v27 = vadd.f32 0.041655596, %v159_v19  ;;  %v167_v29 = vadd.f32 0.008332121, %v166_v20 }
  0x57   :  { %v161_v34 = vmul.f32 %v160_v27, %v158_v12  ;;  %v168_v35 = vmul.f32 %v167_v29, %v158_v12 }
  0x59   :  { %v162_v36 = vadd.f32 -0.4999988, %v161_v34  ;;  %v169_v10 = vadd.f32 -0.16666654, %v168_v35  ;;  %v351_v35 = vmul.f32 %v825_v41, %v823_v28 }
  0x5b   :  { %v163_v39 = vmul.f32 %v162_v36, %v158_v12  ;;  %v170_v40 = vmul.f32 %v169_v10, %v158_v12  ;;  %v364_v36 = vmul.f32 %v835_v48, %v825_v41 }
  0x5d   :  { %v164_v42 = vadd.f32 1.0, %v163_v39  ;;  %v171_v43 = vadd.f32 1.0, %v170_v40 }
  0x5f   :  { %v172_v44 = vmul.f32 %v171_v43, %v156_v7  ;;  %v181_v45 = vxor.u32 2147483648, %v164_v42  ;;  %v355_v43 = vmul.f32 %v835_v48, %v823_v28 }
  0x61   :  { %v178_v49 = vxor.u32 2147483648, %v172_v44  ;;  %v182_v50 = vsel %vm180_vm14, %v181_v45, %v172_v44  ;;  %v336_v51 = vsel %vm334_vm15, %v181_v45, %v172_v44 }
  0x63   :  { %v179_v52 = vsel %vm177_vm1, %v164_v42, %v178_v49  ;;  %v333_v57 = vsel %vm331_vm2, %v164_v42, %v178_v49 }
  0x64   :  { %v183_v58 = vsel %vm176_vm0, %v179_v52, %v182_v50  ;;  %v337_v59 = vsel %vm330_vm3, %v333_v57, %v336_v51 }
  0x65   :  { %v338_v62 = vsel %vm173_vm4, nan, %v337_v59  ;;  %v184_v3 = vsel %vm173_vm4, nan, %v183_v58  ;;  %vm765_vm4 = vmmov 1  }
  0x66   :  { %v918_v1 = vsub.f32 1.0, %v338_v62  ;;  %v340_v2 = vsub.f32 %v782_v0, %v184_v3  ;;  %v349_v34 = vsub.f32 0.0, %v184_v3  ;;  %v369_v57 = vmul.f32 %v184_v3, %v823_v28 }
  0x67   :  { %v358_v62 = vmul.f32 %v184_v3, %v835_v48 }
  0x68   :  { %v347_v4 = vmul.f32 %v346_v60, %v918_v1  ;;  %v361_v6 = vmul.f32 %v360_v63, %v918_v1  ;;  %v372_v11 = vmul.f32 %v371_v5, %v918_v1  ;;  %v389_v12 = vmul.f32 %v381_v13, %v918_v1 }
  0x69   :  { %v394_v53 = vmul.f32 %v393_v31, %v340_v2  ;;  %v397_v61 = vmul.f32 %v384_v14, %v918_v1  ;;  %v402_v15 = vmul.f32 %v401_v32, %v340_v2  ;;  %v405_v16 = vmul.f32 %v387_v17, %v918_v1 }
  0x6a   :  { %v925_v7 = vadd.f32 1.0, %v347_v4  ;;  %v931_v8 = vadd.f32 1.0, %v361_v6  ;;  %v410_v18 = vmul.f32 %v409_v33, %v340_v2  ;;  %v940_v19 = vadd.f32 1.0, %v372_v11 }
  0x6b   :  { %v390_v55 = vadd.f32 %v389_v12, %v388_v46  ;;  %v398_v20 = vadd.f32 %v397_v61, %v396_v47  ;;  %v406_v0 = vadd.f32 %v405_v16, %v404_v9  ;;  %v350_v40 = vmul.f32 %v349_v34, %v835_v48 }
  0x6c   :  { %v412_v54 = vadd.f32 1.0, %v925_v7  ;;  %v419_v21 = vsub.f32 1.0, %v925_v7  ;;  %v976_v42 = vmul.f32 %v351_v35, %v918_v1  ;;  %v363_v49 = vmul.f32 %v349_v34, %v823_v28 }
  0x6d   :  { %v945_v22 = vadd.f32 %v394_v53, %v390_v55  ;;  %v947_v14 = vadd.f32 %v402_v15, %v398_v20  ;;  %v951_v24 = vadd.f32 %v410_v18, %v406_v0  ;;  %v365_v50 = vmul.f32 %v364_v36, %v918_v1 }
  0x6e   :  { %v413_v56 = vadd.f32 %v412_v54, %v931_v8  ;;  %v416_v13 = vsub.f32 %v412_v54, %v931_v8  ;;  %v420_v17 = vadd.f32 %v419_v21, %v931_v8  ;;  %v423_v23 = vsub.f32 %v419_v21, %v931_v8 }
  0x6f   :  { %v354_v60 = vmul.f32 %v184_v3, %v825_v41  ;;  %v356_v4 = vmul.f32 %v355_v43, %v918_v1  ;;  %v367_v5 = vmul.f32 %v349_v34, %v825_v41  ;;  %v991_v47 = vadd.f32 %v976_v42, %v350_v40 }
  0x70   :  { %v414_v25 = vadd.f32 %v413_v56, %v940_v19  ;;  %v417_v26 = vsub.f32 %v416_v13, %v940_v19  ;;  %v421_v27 = vsub.f32 %v420_v17, %v940_v19  ;;  %v424_v29 = vadd.f32 %v423_v23, %v940_v19 }
  0x71   :  { %v993_v9 = vadd.f32 %v365_v50, %v363_v49  ;;  %v995_v12 = vadd.f32 %v369_v57, %v365_v50  ;;  %v1025_v43 = vadd.f32 %v356_v4, %v354_v60  ;;  %v1032_v49 = vadd.f32 %v358_v62, %v976_v42 }
  0x72   :  { %v957_v30 = vmax.f32 %v414_v25, 0.0  ;;  %v959_v31 = vmax.f32 %v417_v26, 0.0  ;;  %v961_v32 = vmax.f32 %v421_v27, 0.0  ;;  %v963_v33 = vmax.f32 %v424_v29, 0.0 }
  0x73   :  { %v1034_v50 = vadd.f32 %v367_v5, %v356_v4  ;;  %v487_v42 = vsub.f32 %v995_v12, %v993_v9  ;;  %v491_v60 = vsub.f32 %v1032_v49, %v991_v47  ;;  %v495_v62 = vadd.f32 %v1032_v49, %v991_v47 }
  0x74   :  { %687 = vrsqrt.f32 %v957_v30  ;;  %vm433_vm5 = vcmp.eq.f32.partialorder %v957_v30, inf  ;;  %vm435_vm6 = vcmp.eq.f32.partialorder %v957_v30, 0.0  ;;  %v436_v41 = vand.u32 2147483648, %v957_v30 }
  0x75   :  { %689 = vrsqrt.f32 %v959_v31  ;;  %vm445_vm7 = vcmp.eq.f32.partialorder %v959_v31, inf  ;;  %vm447_vm8 = vcmp.eq.f32.partialorder %v959_v31, 0.0  ;;  %v448_v18 = vand.u32 2147483648, %v959_v31 }
  0x76   :  { %691 = vrsqrt.f32 %v961_v32  ;;  %vm457_vm9 = vcmp.eq.f32.partialorder %v961_v32, inf  ;;  %vm459_vm10 = vcmp.eq.f32.partialorder %v961_v32, 0.0  ;;  %v460_v20 = vand.u32 2147483648, %v961_v32 }
  0x77   :  { %693 = vrsqrt.f32 %v963_v33  ;;  %vm469_vm11 = vcmp.eq.f32.partialorder %v963_v33, inf  ;;  %v472_v13 = vand.u32 2147483648, %v963_v33  ;;  %vm471_vm12 = vcmp.eq.f32.partialorder %v963_v33, 0.0 }
  0x78   :  { %v502_v4 = vadd.f32 %v995_v12, %v993_v9 }
  0x7a   :  { %v688_v10 = vpop.eup %687 }
  0x7b   :  { %v690_v37 = vpop.eup %689  ;;  %v427_v38 = vmul.f32 %v688_v10, %v957_v30 }
  0x7c   :  { %v692_v39 = vpop.eup %691  ;;  %v439_v44 = vmul.f32 %v690_v37, %v959_v31 }
  0x7d   :  { %v694_v45 = vpop.eup %693  ;;  %v428_v51 = vmul.f32 %v688_v10, %v427_v38  ;;  %v451_v52 = vmul.f32 %v692_v39, %v961_v32 }
  0x7e   :  { %v440_v58 = vmul.f32 %v690_v37, %v439_v44  ;;  %v463_v59 = vmul.f32 %v694_v45, %v963_v33 }
  0x7f   :  { %v429_v63 = vmul.f32 0.5, %v428_v51  ;;  %v452_v2 = vmul.f32 %v692_v39, %v451_v52 }
  0x80   :  { %v441_v6 = vmul.f32 0.5, %v440_v58  ;;  %v464_v46 = vmul.f32 %v694_v45, %v463_v59  ;;  %v489_v59 = vsub.f32 %v1025_v43, %v1034_v50 }
  0x81   :  { %v430_v28 = vsub.f32 1.5, %v429_v63  ;;  %v453_v11 = vmul.f32 0.5, %v452_v2  ;;  %v497_v2 = vadd.f32 %v1034_v50, %v1025_v43 }
  0x82   :  { %v442_v48 = vsub.f32 1.5, %v441_v6  ;;  %v465_v3 = vmul.f32 0.5, %v464_v46 }
  0x83   :  { %v431_v53 = vmul.f32 %v688_v10, %v430_v28  ;;  %v454_v1 = vsub.f32 1.5, %v453_v11 }
  0x84   :  { %v443_v61 = vmul.f32 %v690_v37, %v442_v48  ;;  %v466_v15 = vsub.f32 1.5, %v465_v3 }
  0x85   :  { %v432_v16 = vmul.f32 %v431_v53, %v957_v30  ;;  %v455_v54 = vmul.f32 %v692_v39, %v454_v1 }
  0x86   :  { %v444_v55 = vmul.f32 %v443_v61, %v959_v31  ;;  %v467_v21 = vmul.f32 %v694_v45, %v466_v15 }
  0x87   :  { %v434_v0 = vsel %vm433_vm5, %v957_v30, %v432_v16  ;;  %v456_v56 = vmul.f32 %v455_v54, %v961_v32 }
  0x88   :  { %v437_v17 = vsel %vm435_vm6, %v436_v41, %v434_v0  ;;  %v446_v23 = vsel %vm445_vm7, %v959_v31, %v444_v55  ;;  %v468_v25 = vmul.f32 %v467_v21, %v963_v33  ;;  %v565_v21 = vlaneseq }
  0x89   :  { %v449_v26 = vsel %vm447_vm8, %v448_v18, %v446_v23  ;;  %v458_v27 = vsel %vm457_vm9, %v961_v32, %v456_v56  ;;  %v474_v29 = vmax.f32 %v437_v17, 0.1 }
  0x8a   :  { %v461_v34 = vsel %vm459_vm10, %v460_v20, %v458_v27  ;;  %v470_v35 = vsel %vm469_vm11, %v963_v33, %v468_v25  ;;  %v477_v36 = vmax.f32 %v449_v26, 0.1  ;;  %vm508_vm13 = vcmp.ge.f32.partialorder %v437_v17, %v449_v26 }
  0x8b   :  { %v473_v10 = vsel %vm471_vm12, %v472_v13, %v470_v35  ;;  %v475_v37 = vmul.f32 2.0, %v474_v29  ;;  %v480_v38 = vmax.f32 %v461_v34, 0.1  ;;  %vm509_vm14 = vcmp.ge.f32.partialorder %v437_v17, %v461_v34 }
  0x8c   :  { %v478_v39 = vmul.f32 2.0, %v477_v36  ;;  %v483_v40 = vmax.f32 %v473_v10, 0.1  ;;  %vm510_vm15 = vmand %vm508_vm13, %vm509_vm14  ;;  %vm511_vm0 = vcmp.ge.f32.partialorder %v437_v17, %v473_v10  ;;  %vm514_vm1 = vcmp.ge.f32.partialorder %v449_v26, %v461_v34 }
  0x8d   :  { %695 = vrcp.f32 %v475_v37  ;;  %v481_v44 = vmul.f32 2.0, %v480_v38  ;;  %vm1027_vm2 = vmand %vm510_vm15, %vm511_vm0  ;;  %vm516_vm3 = vcmp.ge.f32.partialorder %v449_v26, %v473_v10  ;;  %vm520_vm10 = vcmp.ge.f32.partialorder %v461_v34, %v473_v10 }
  0x8e   :  { %697 = vrcp.f32 %v478_v39  ;;  %v484_v51 = vmul.f32 2.0, %v483_v40  ;;  %vm1038_vm5 = vmxor %vm1027_vm2, %vm765_vm4  ;;  %v566_v38 = vshrl.u32 %v565_v21, 7  ;;  %v570_v39 = vperm.slane %v925_v7, 0 }
  0x8f   :  { %699 = vrcp.f32 %v481_v44  ;;  %vm515_vm6 = vmand %vm1038_vm5, %vm514_vm1  ;;  %v575_v40 = vperm.slane %v991_v47, 0  ;;  %v585_v47 = vperm.slane %v1032_v49, 0 }
  0x90   :  { %701 = vrcp.f32 %v484_v51  ;;  %vm1046_vm7 = vmand %vm515_vm6, %vm516_vm3  ;;  %vm568_vm13 = vcmp.eq.s32.totalorder %v566_v38, 0  ;;  %vm573_vm14 = vcmp.eq.s32.totalorder %v566_v38, 1  ;;  %vm578_vm15 = vcmp.eq.s32.totalorder %v566_v38, 2 }
  0x91   :  { %vm1052_vm8 = vmxor %vm1046_vm7, %vm765_vm4  ;;  %vm583_vm0 = vcmp.eq.s32.totalorder %v566_v38, 3  ;;  %vm588_vm1 = vcmp.eq.s32.totalorder %v566_v38, 4  ;;  %vm598_vm3 = vcmp.eq.s32.totalorder %v566_v38, 6  ;;  %vm603_vm4 = vcmp.eq.s32.totalorder %v566_v38, 7 }
  0x92   :  { %vm519_vm9 = vmand %vm1038_vm5, %vm1052_vm8 }
  0x93   :  { %v696_v63 = vpop.eup %695  ;;  %vm521_vm11 = vmand %vm519_vm9, %vm520_vm10 }
  0x94   :  { %v698_v5 = vpop.eup %697  ;;  %v486_v6 = vmul.f32 %v696_v63, %v957_v30  ;;  %v488_v46 = vmul.f32 %v696_v63, %v487_v42  ;;  %v490_v28 = vmul.f32 %v696_v63, %v489_v59  ;;  %v492_v11 = vmul.f32 %v696_v63, %v491_v60 }
  0x95   :  { %v700_v48 = vpop.eup %699  ;;  %v493_v3 = vmul.f32 %v698_v5, %v487_v42  ;;  %v494_v53 = vmul.f32 %v698_v5, %v959_v31  ;;  %v496_v41 = vmul.f32 %v698_v5, %v495_v62  ;;  %v498_v1 = vmul.f32 %v698_v5, %v497_v2 }
  0x96   :  { %v702_v61 = vpop.eup %701  ;;  %v499_v15 = vmul.f32 %v700_v48, %v489_v59  ;;  %v500_v16 = vmul.f32 %v700_v48, %v495_v62  ;;  %v501_v18 = vmul.f32 %v700_v48, %v961_v32  ;;  %v503_v54 = vmul.f32 %v700_v48, %v502_v4 }
  0x97   :  { %v504_v30 = vmul.f32 %v702_v61, %v491_v60  ;;  %v505_v55 = vmul.f32 %v702_v61, %v497_v2  ;;  %v506_v20 = vmul.f32 %v702_v61, %v502_v4  ;;  %v507_v31 = vmul.f32 %v702_v61, %v963_v33 }
  0x98   :  { %v580_v42 = vperm.slane %v1025_v43, 0  ;;  %v1099_v62 = vadd.s32 8, %v566_v38  ;;  %v571_v2 = vsel %vm568_vm13, %v570_v39, 0.0  ;;  %v590_v4 = vperm.slane %v931_v8, 0 }
  0x99   :  { %v522_v0 = vsel %vm521_vm11, %v499_v15, %v504_v30  ;;  %v525_v56 = vsel %vm521_vm11, %v500_v16, %v505_v55  ;;  %v528_v13 = vsel %vm521_vm11, %v501_v18, %v506_v20  ;;  %v531_v17 = vsel %vm521_vm11, %v503_v54, %v507_v31 }
  0x9a   :  { %v523_v32 = vsel %vm1046_vm7, %v493_v3, %v522_v0  ;;  %v526_v23 = vsel %vm1046_vm7, %v494_v53, %v525_v56  ;;  %v529_v25 = vsel %vm1046_vm7, %v496_v41, %v528_v13  ;;  %v532_v26 = vsel %vm1046_vm7, %v498_v1, %v531_v17 }
  0x9b   :  { %v524_v33 = vsel %vm1027_vm2, %v486_v6, %v523_v32  ;;  %v527_v27 = vsel %vm1027_vm2, %v488_v46, %v526_v23  ;;  %v530_v29 = vsel %vm1027_vm2, %v490_v28, %v529_v25  ;;  %v533_v34 = vsel %vm1027_vm2, %v492_v11, %v532_v26 }
  0x9c   :  { %vm534_vm12 = vcmp.lt.f32.partialorder %v524_v33, 0.0  ;;  %v535_v35 = vsub.f32 0.0, %v524_v33  ;;  %v537_v36 = vsub.f32 0.0, %v527_v27  ;;  %v539_v10 = vsub.f32 0.0, %v530_v29 }
  0x9d   :  { %v541_v37 = vsub.f32 0.0, %v533_v34  ;;  %v576_v7 = vsel %vm573_vm14, %v575_v40, %v571_v2  ;;  %vm593_vm2 = vcmp.eq.s32.totalorder %v566_v38, 5  ;;  %v595_v6 = vperm.slane %v993_v9, 0 }
  0x9e   :  { %v536_v44 = vsel %vm534_vm12, %v535_v35, %v524_v33  ;;  %v538_v51 = vsel %vm534_vm12, %v537_v36, %v527_v27  ;;  %v540_v52 = vsel %vm534_vm12, %v539_v10, %v530_v29  ;;  %v581_v5 = vsel %vm578_vm15, %v580_v42, %v576_v7 }
  0x9f   :  { %v542_v57 = vsel %vm534_vm12, %v541_v37, %v533_v34  ;;  %v543_v58 = vmul.f32 %v536_v44, %v536_v44  ;;  %v544_v59 = vmul.f32 %v538_v51, %v538_v51  ;;  %v546_v45 = vmul.f32 %v540_v52, %v540_v52 }
  0xa0   :  { %v548_v60 = vmul.f32 %v542_v57, %v542_v57  ;;  %v586_v46 = vsel %vm583_vm0, %v585_v47, %v581_v5  ;;  %v600_v28 = vperm.slane %v1034_v50, 0  ;;  %v605_v3 = vperm.slane %v995_v12, 0 }
  0xa1   :  { %v545_v63 = vadd.f32 %v544_v59, %v543_v58  ;;  %v591_v48 = vsel %vm588_vm1, %v590_v4, %v586_v46  ;;  %vm609_vm5 = vcmp.eq.s32.totalorder %v1099_v62, 8  ;;  %v610_v53 = vperm.slane %v940_v19, 0 }
  0xa2   :  { %v596_v49 = vsel %vm593_vm2, %v595_v6, %v591_v48  ;;  %vm614_vm6 = vcmp.eq.s32.totalorder %v1099_v62, 9  ;;  %v615_v8 = vperm.slane %v945_v22, 0  ;;  %vm619_vm7 = vcmp.eq.s32.totalorder %v1099_v62, 10 }
  0xa3   :  { %v547_v43 = vadd.f32 %v546_v45, %v545_v63  ;;  %v601_v9 = vsel %vm598_vm3, %v600_v28, %v596_v49  ;;  %v620_v50 = vperm.slane %v947_v14, 0  ;;  %v612_v61 = vsel %vm609_vm5, %v610_v53, 0.0 }
  0xa4   :  { %v606_v1 = vsel %vm603_vm4, %v605_v3, %v601_v9  ;;  %vm624_vm8 = vcmp.eq.s32.totalorder %v1099_v62, 11  ;;  %v625_v12 = vperm.slane %v951_v24, 0  ;;  %v617_v15 = vsel %vm614_vm6, %v615_v8, %v612_v61 }
  0xa5   :  { %v549_v11 = vadd.f32 %v548_v60, %v547_v43  ;;  %648 = vst [vmem:[#allocation5] sm:$0xff] %v606_v1  ;;  %v622_v19 = vsel %vm619_vm7, %v620_v50, %v617_v15  ;;  %vm629_vm12 = vcmp.eq.s32.totalorder %v1099_v62, 12  ;;  %vm634_vm13 = vcmp.eq.s32.totalorder %v1099_v62, 13 }
  0xa6   :  { %v627_v16 = vsel %vm624_vm8, %v625_v12, %v622_v19  ;;  %vm639_vm14 = vcmp.eq.s32.totalorder %v1099_v62, 14  ;;  %vm644_vm15 = vcmp.eq.s32.totalorder %v1099_v62, 15 }
  0xa7   :  { %v550_v41 = vmax.f32 %v549_v11, 1e-24 }
  0xa9   :  { %703 = vrsqrt.f32 %v550_v41  ;;  %vm557_vm9 = vweird.f32 %v550_v41 }
  0xaf   :  { %v704_v18 = vpop.eup %703 }
  0xb0   :  { %v552_v54 = vmul.f32 %v704_v18, %v550_v41  ;;  %vm558_vm10 = vweird.f32 %v704_v18 }
  0xb1   :  { %vm559_vm11 = vmor %vm557_vm9, %vm558_vm10 }
  0xb2   :  { %v553_v22 = vmul.f32 %v704_v18, %v552_v54 }
  0xb4   :  { %v554_v30 = vmul.f32 0.5, %v553_v22 }
  0xb6   :  { %v555_v55 = vsub.f32 1.5, %v554_v30 }
  0xb8   :  { %v556_v14 = vmul.f32 %v704_v18, %v555_v55 }
  0xba   :  { %v560_v20 = vsel %vm559_vm11, %v704_v18, %v556_v14 }
  0xbb   :  { %v561_v31 = vmul.f32 %v560_v20, %v536_v44  ;;  %v562_v21 = vmul.f32 %v560_v20, %v538_v51  ;;  %v563_v0 = vmul.f32 %v560_v20, %v540_v52  ;;  %v564_v56 = vmul.f32 %v560_v20, %v542_v57 }
  0xbd   :  { %v630_v24 = vperm.slane %v561_v31, 0  ;;  %v635_v13 = vperm.slane %v562_v21, 0  ;;  %v640_v17 = vperm.slane %v563_v0, 0  ;;  %v645_v32 = vperm.slane %v564_v56, 0 }
  0xbf   :  { %v632_v23 = vsel %vm629_vm12, %v630_v24, %v627_v16 }
  0xc0   :  { %v637_v25 = vsel %vm634_vm13, %v635_v13, %v632_v23 }
  0xc1   :  { %v642_v26 = vsel %vm639_vm14, %v640_v17, %v637_v25 }
  0xc2   :  { %v647_v33 = vsel %vm644_vm15, %v645_v32, %v642_v26 }
  0xc3   :  { %649 = vst [vmem:[#allocation5 + $0x8] sm:$0xff] %v647_v33 }
  0xc4   :  { %662 = dma.vmem_to_hbm [thread:$0]  %s655_s11, 256, %s657_s14, [#allocation4], %s767_s15, %s767_s15, %s768_s16  }
  0xc5   :  { %755 = dma.done.wait [#allocation4], 256  }
  0xc6   :  { %756 = vsyncadd [#allocation4], 4294967040 }
  0xc7   :  { %667 = vsyncpa [#allocation3], 1 }
  0xc8   :  { %668 = vsyncpa [#allocation4], 1 }

</bundles_post_ra>
